<compile_context>
chip_gen: v5e
topology: v5e:2x2
jax: 0.10.0
libtpu: 0.0.40
codegen_flags: <defaults>
</compile_context>

<pallas_src>
import jax
import jax.numpy as jnp
from jax.experimental import pallas as pl
from jax.experimental.pallas import tpu as pltpu


def vsn_kernel(xt_ref, w1_ref, b1_ref, w2_ref, b2_ref, wf_ref,
               out_t_ref, weights_t_ref):
    # All tensors are batch-transposed: batch on the lane (last) axis.
    xt = xt_ref[...]                                               # (D_in, TB)

    # Gating MLP: h = relu(W1 @ x + b1); logits = W2 @ h + b2   (Dropout = id)
    h = jnp.dot(w1_ref[...], xt, preferred_element_type=jnp.float32) + b1_ref[...]
    h = jnp.maximum(h, 0.0)
    logits = jnp.dot(w2_ref[...], h.astype(w2_ref.dtype),
                     preferred_element_type=jnp.float32) + b2_ref[...]

    # Softmax over the feature axis (axis 0 = sublanes), in f32.
    m = jnp.max(logits, axis=0, keepdims=True)
    e = jnp.exp(logits - m)
    s = jnp.sum(e, axis=0, keepdims=True)
    r = pl.reciprocal(s, approx=True)
    r = r * (2.0 - s * r)                      # one Newton step -> ~f32 accuracy
    w = e * r                                  # (D_in, TB) f32

    weights_t_ref[...] = w.astype(weights_t_ref.dtype)

    # weighted_sum^T = [W_proj^T | B_proj^T] @ [w * x ; w]  -> single MXU matmul
    lhs = jnp.concatenate([w * xt.astype(jnp.float32), w], axis=0)  # (2*D_in, TB)
    out_t = jnp.dot(wf_ref[...], lhs.astype(wf_ref.dtype),
                    preferred_element_type=jnp.float32)             # (d_model, TB)
    out_t_ref[...] = out_t.astype(out_t_ref.dtype)


def variable_selection_network(x, params, *, tb=None):
    """x: (B, input_dim). Returns (weighted_sum (B, d_model), weights (B, input_dim))."""
    B, d_in = x.shape
    d_model = params["k_wf_t"].shape[0]
    dtype = x.dtype
    itemsize = jnp.dtype(dtype).itemsize

    # Batch tile: multiple of 128 lanes, big enough to amortize per-step overhead
    # (~0.35 us/step), small enough (per-block buffers are KBs) to be safe even
    # under v7x's 64 MiB VMEM.
    if tb is None:
        tb = max(128, min(1024, pl.next_power_of_2(B)))
    b_pad = pl.cdiv(B, tb) * tb
    grid = (b_pad // tb,)

    # Batch on the lane axis: pad then transpose (layout plumbing in the wrapper).
    x_t = jnp.pad(x, ((0, b_pad - B), (0, 0))).T                    # (d_in, b_pad)

    const = lambda i: (0, 0)
    batch_map = lambda i: (0, i)

    param_bytes = sum(int(p.size) * p.dtype.itemsize for p in
                      (params["k_w1"], params["k_b1"], params["k_w2"],
                       params["k_b2"], params["k_wf_t"]))
    cost = pl.CostEstimate(
        flops=2 * b_pad * (2 * d_in * d_in + 2 * d_in * d_model),
        transcendentals=b_pad * d_in,
        bytes_accessed=itemsize * b_pad * (2 * d_in + d_model) + param_bytes,
    )

    fn = pl.pallas_call(
        vsn_kernel,
        out_shape=(
            jax.ShapeDtypeStruct((d_model, b_pad), dtype),   # weighted_sum^T
            jax.ShapeDtypeStruct((d_in, b_pad), dtype),      # weights^T
        ),
        grid=grid,
        in_specs=[
            pl.BlockSpec((d_in, tb), batch_map),             # x^T tile (streamed)
            pl.BlockSpec((d_in, d_in), const),               # W1 (VMEM-resident)
            pl.BlockSpec((d_in, 1), const),                  # b1
            pl.BlockSpec((d_in, d_in), const),               # W2
            pl.BlockSpec((d_in, 1), const),                  # b2
            pl.BlockSpec((d_model, 2 * d_in), const),        # [W_proj^T | B_proj^T]
        ],
        out_specs=(
            pl.BlockSpec((d_model, tb), batch_map),
            pl.BlockSpec((d_in, tb), batch_map),
        ),
        compiler_params=pltpu.CompilerParams(
            dimension_semantics=("parallel",),               # megacore on v7x
        ),
        cost_estimate=cost,
    )
    out_t, w_t = fn(x_t, params["k_w1"], params["k_b1"],
                    params["k_w2"], params["k_b2"], params["k_wf_t"])
    return out_t[:, :B].T, w_t[:, :B].T


def init_params(key, input_dim, d_model, dtype=jnp.float32):
    ks = jax.random.split(key, 6)
    # feature_proj: input_dim x Linear(1, d_model); row i = feature i's weight/bias.
    w_proj = 0.1 * jax.random.normal(ks[0], (input_dim, d_model), dtype)
    b_proj = 0.1 * jax.random.normal(ks[1], (input_dim, d_model), dtype)
    # variable_weights: two Linear(input_dim, input_dim), PyTorch (out, in) layout.
    w1 = 0.1 * jax.random.normal(ks[2], (input_dim, input_dim), dtype)
    b1 = 0.1 * jax.random.normal(ks[3], (input_dim,), dtype)
    w2 = 0.1 * jax.random.normal(ks[4], (input_dim, input_dim), dtype)
    b2 = 0.1 * jax.random.normal(ks[5], (input_dim,), dtype)
    return dict(
        # reference-layout params
        w_proj=w_proj, b_proj=b_proj, w1=w1, b1=b1, w2=w2, b2=b2,
        # kernel-layout (batch-transposed / fused) params
        k_w1=w1, k_b1=b1.reshape(input_dim, 1),
        k_w2=w2, k_b2=b2.reshape(input_dim, 1),
        k_wf_t=jnp.concatenate([w_proj.T, b_proj.T], axis=1),   # (d_model, 2*input_dim)
    )


def reference(x, p):
    # Pure-JAX mirror of the PyTorch forward (eval mode).
    projected = x[:, :, None] * p["w_proj"][None] + p["b_proj"][None]   # (B, D_in, d_model)
    h = jnp.maximum(x @ p["w1"].T + p["b1"], 0.0)
    logits = h @ p["w2"].T + p["b2"]
    weights = jax.nn.softmax(logits, axis=1)
    weighted_sum = jnp.sum(projected * weights[:, :, None], axis=1)
    return weighted_sum, weights


if __name__ == "__main__":
    key = jax.random.PRNGKey(0)
    k_x, k_p = jax.random.split(key)

    B, input_dim, d_model = 8, 8, 32
    x = jax.random.normal(k_x, (B, input_dim), jnp.float32)
    params = init_params(k_p, input_dim, d_model)

    out, weights = variable_selection_network(x, params)
    out = jax.block_until_ready(out)
    weights = jax.block_until_ready(weights)

    ref_out, ref_w = reference(x, params)
    assert out.shape == (B, d_model) and weights.shape == (B, input_dim)
    assert jnp.allclose(out, ref_out, atol=2e-5, rtol=2e-5)
    assert jnp.allclose(weights, ref_w, atol=2e-5, rtol=2e-5)

    print("KERNEL_OK")
</pallas_src>

<mosaic_0001>
module attributes {stable_mosaic.version = 11 : i64} {
  func.func @vsn_kernel(%arg0: i32, %arg1: memref<8x128xf32, #tpu.memory_space<vmem>>, %arg2: memref<8x8xf32, #tpu.memory_space<vmem>>, %arg3: memref<8x1xf32, #tpu.memory_space<vmem>>, %arg4: memref<8x8xf32, #tpu.memory_space<vmem>>, %arg5: memref<8x1xf32, #tpu.memory_space<vmem>>, %arg6: memref<32x16xf32, #tpu.memory_space<vmem>>, %arg7: memref<32x128xf32, #tpu.memory_space<vmem>>, %arg8: memref<8x128xf32, #tpu.memory_space<vmem>>) attributes {dimension_semantics = [#tpu.dimension_semantics<parallel>], iteration_bounds = array<i64: 1>, scalar_prefetch = 0 : i64, scratch_operands = 0 : i64, tpu.core_type = #tpu.core_type<tc>, window_params = [{transform_indices = @transform_0, window_bounds = array<i64: 8, 128>}, {pipeline_mode = #tpu.pipeline_mode<synchronous>, transform_indices = @transform_1, window_bounds = array<i64: 8, 8>}, {pipeline_mode = #tpu.pipeline_mode<synchronous>, transform_indices = @transform_2, window_bounds = array<i64: 8, 1>}, {pipeline_mode = #tpu.pipeline_mode<synchronous>, transform_indices = @transform_3, window_bounds = array<i64: 8, 8>}, {pipeline_mode = #tpu.pipeline_mode<synchronous>, transform_indices = @transform_4, window_bounds = array<i64: 8, 1>}, {pipeline_mode = #tpu.pipeline_mode<synchronous>, transform_indices = @transform_5, window_bounds = array<i64: 32, 16>}, {transform_indices = @transform_6, window_bounds = array<i64: 32, 128>}, {transform_indices = @transform_7, window_bounds = array<i64: 8, 128>}]} {
    %c0 = arith.constant 0 : index
    %c0_0 = arith.constant 0 : index
    %0 = vector.load %arg1[%c0, %c0_0] : memref<8x128xf32, #tpu.memory_space<vmem>>, vector<8x128xf32>
    %c0_1 = arith.constant 0 : index
    %c0_2 = arith.constant 0 : index
    %1 = vector.load %arg2[%c0_1, %c0_2] : memref<8x8xf32, #tpu.memory_space<vmem>>, vector<8x8xf32>
    %cst = arith.constant dense<0.000000e+00> : vector<8x128xf32>
    %2 = tpu.matmul %1, %0, %cst {dimension_numbers = #tpu.dot_dimension_numbers<[1], [0], [0], [1], [0, 0, 1, 1], [], []>} : vector<8x8xf32>, vector<8x128xf32>, vector<8x128xf32> -> vector<8x128xf32>
    %c0_3 = arith.constant 0 : index
    %c0_4 = arith.constant 0 : index
    %3 = vector.load %arg3[%c0_3, %c0_4] : memref<8x1xf32, #tpu.memory_space<vmem>>, vector<8x1xf32>
    %4 = vector.broadcast %3 : vector<8x1xf32> to vector<8x128xf32>
    %5 = arith.addf %2, %4 : vector<8x128xf32>
    %cst_5 = arith.constant 0.000000e+00 : f32
    %6 = vector.broadcast %cst_5 : f32 to vector<8x128xf32>
    %7 = arith.maximumf %5, %6 : vector<8x128xf32>
    %c0_6 = arith.constant 0 : index
    %c0_7 = arith.constant 0 : index
    %8 = vector.load %arg4[%c0_6, %c0_7] : memref<8x8xf32, #tpu.memory_space<vmem>>, vector<8x8xf32>
    %cst_8 = arith.constant dense<0.000000e+00> : vector<8x128xf32>
    %9 = tpu.matmul %8, %7, %cst_8 {dimension_numbers = #tpu.dot_dimension_numbers<[1], [0], [0], [1], [0, 0, 1, 1], [], []>} : vector<8x8xf32>, vector<8x128xf32>, vector<8x128xf32> -> vector<8x128xf32>
    %c0_9 = arith.constant 0 : index
    %c0_10 = arith.constant 0 : index
    %10 = vector.load %arg5[%c0_9, %c0_10] : memref<8x1xf32, #tpu.memory_space<vmem>>, vector<8x1xf32>
    %11 = vector.broadcast %10 : vector<8x1xf32> to vector<8x128xf32>
    %12 = arith.addf %9, %11 : vector<8x128xf32>
    %cst_11 = arith.constant dense<0xFF800000> : vector<128xf32>
    %13 = vector.multi_reduction <maximumf>, %12, %cst_11 [0] : vector<8x128xf32> to vector<128xf32>
    %14 = vector.shape_cast %13 : vector<128xf32> to vector<1x128xf32>
    %15 = vector.broadcast %14 : vector<1x128xf32> to vector<8x128xf32>
    %16 = arith.subf %12, %15 : vector<8x128xf32>
    %17 = math.exp %16 : vector<8x128xf32>
    %cst_12 = arith.constant dense<0.000000e+00> : vector<128xf32>
    %18 = vector.multi_reduction <add>, %17, %cst_12 [0] : vector<8x128xf32> to vector<128xf32>
    %19 = vector.shape_cast %18 : vector<128xf32> to vector<1x128xf32>
    %20 = tpu.reciprocal %19 {approx = true} : vector<1x128xf32> -> vector<1x128xf32>
    %21 = arith.mulf %19, %20 : vector<1x128xf32>
    %cst_13 = arith.constant 2.000000e+00 : f32
    %22 = vector.broadcast %cst_13 : f32 to vector<1x128xf32>
    %23 = arith.subf %22, %21 : vector<1x128xf32>
    %24 = arith.mulf %20, %23 : vector<1x128xf32>
    %25 = vector.broadcast %24 : vector<1x128xf32> to vector<8x128xf32>
    %26 = arith.mulf %17, %25 : vector<8x128xf32>
    %c0_14 = arith.constant 0 : index
    %c0_15 = arith.constant 0 : index
    %27 = vector.load %arg8[%c0_14, %c0_15] : memref<8x128xf32, #tpu.memory_space<vmem>>, vector<8x128xf32>
    tpu.vector_store %arg8[%c0_14, %c0_15], %26 {strides = array<i32>} : memref<8x128xf32, #tpu.memory_space<vmem>>, vector<8x128xf32>,
    %28 = arith.mulf %26, %0 : vector<8x128xf32>
    %29 = tpu.concatenate %28, %26 in 0 : vector<8x128xf32>, vector<8x128xf32> -> vector<16x128xf32>
    %c0_16 = arith.constant 0 : index
    %c0_17 = arith.constant 0 : index
    %30 = vector.load %arg6[%c0_16, %c0_17] : memref<32x16xf32, #tpu.memory_space<vmem>>, vector<32x16xf32>
    %cst_18 = arith.constant dense<0.000000e+00> : vector<32x128xf32>
    %31 = tpu.matmul %30, %29, %cst_18 {dimension_numbers = #tpu.dot_dimension_numbers<[1], [0], [0], [1], [0, 0, 1, 1], [], []>} : vector<32x16xf32>, vector<16x128xf32>, vector<32x128xf32> -> vector<32x128xf32>
    %c0_19 = arith.constant 0 : index
    %c0_20 = arith.constant 0 : index
    %32 = vector.load %arg7[%c0_19, %c0_20] : memref<32x128xf32, #tpu.memory_space<vmem>>, vector<32x128xf32>
    tpu.vector_store %arg7[%c0_19, %c0_20], %31 {strides = array<i32>} : memref<32x128xf32, #tpu.memory_space<vmem>>, vector<32x128xf32>,
    return
  }
  func.func @transform_0(%arg0: i32) -> (i32, i32) {
    %c0_i32 = arith.constant 0 : i32
    %c0_i32_0 = arith.constant 0 : i32
    return %c0_i32, %arg0 : i32, i32
  }
  func.func @transform_1(%arg0: i32) -> (i32, i32) {
    %c0_i32 = arith.constant 0 : i32
    %c0_i32_0 = arith.constant 0 : i32
    %c0_i32_1 = arith.constant 0 : i32
    return %c0_i32, %c0_i32_0 : i32, i32
  }
  func.func @transform_2(%arg0: i32) -> (i32, i32) {
    %c0_i32 = arith.constant 0 : i32
    %c0_i32_0 = arith.constant 0 : i32
    %c0_i32_1 = arith.constant 0 : i32
    return %c0_i32, %c0_i32_0 : i32, i32
  }
  func.func @transform_3(%arg0: i32) -> (i32, i32) {
    %c0_i32 = arith.constant 0 : i32
    %c0_i32_0 = arith.constant 0 : i32
    %c0_i32_1 = arith.constant 0 : i32
    return %c0_i32, %c0_i32_0 : i32, i32
  }
  func.func @transform_4(%arg0: i32) -> (i32, i32) {
    %c0_i32 = arith.constant 0 : i32
    %c0_i32_0 = arith.constant 0 : i32
    %c0_i32_1 = arith.constant 0 : i32
    return %c0_i32, %c0_i32_0 : i32, i32
  }
  func.func @transform_5(%arg0: i32) -> (i32, i32) {
    %c0_i32 = arith.constant 0 : i32
    %c0_i32_0 = arith.constant 0 : i32
    %c0_i32_1 = arith.constant 0 : i32
    return %c0_i32, %c0_i32_0 : i32, i32
  }
  func.func @transform_6(%arg0: i32) -> (i32, i32) {
    %c0_i32 = arith.constant 0 : i32
    %c0_i32_0 = arith.constant 0 : i32
    return %c0_i32, %arg0 : i32, i32
  }
  func.func @transform_7(%arg0: i32) -> (i32, i32) {
    %c0_i32 = arith.constant 0 : i32
    %c0_i32_0 = arith.constant 0 : i32
    return %c0_i32, %arg0 : i32, i32
  }
}

</mosaic_0001>

<bundles_post_ra>
// kernel: tpu_custom_call.1
= control target key start
LH: loop header
LB: loop body
LE: loop exit
PB: predicated region body
PF: predicated region fallthrough
CT: control target
= control target key end

     0   :  { %13 = vsyncpa [#allocation3], 0  ;;  %vm35_vm0 = vcmask 64512   ;;  %v270_v3 = vmov 0   ;;  %s350_s0 = inlined_call_operand.vmem [shape: f32[8,128], index: 0, kind: input, shape index: {}]   ;;  %s351_s1 = inlined_call_operand.vmem [shape: f32[8,8], index: 1, kind: input, shape index: {}]   ;;  %s352_s2 = inlined_call_operand.vmem [shape: f32[8,1], index: 2, kind: input, shape index: {}]   ;;  %s353_s3 = inlined_call_operand.vmem [shape: f32[8,8], index: 3, kind: input, shape index: {}]   ;;  %s354_s4 = inlined_call_operand.vmem [shape: f32[8,1], index: 4, kind: input, shape index: {}]   ;;  %s355_s5 = inlined_call_operand.vmem [shape: f32[32,16], index: 5, kind: input, shape index: {}]   ;;  %s356_s6 = inlined_call_operand.hbm [shape: f32[32,128], index: 6, kind: output, shape index: {0}]   ;;  %s357_s7 = inlined_call_operand.hbm [shape: f32[8,128], index: 7, kind: output, shape index: {1}]  }
   0x1   :  { %v27_v0 = vld [vmem:[%s350_s0] sm:$0xff]  ;;  %213 = vset.pattern.permute.xlu0 %v270_v3 }
   0x2   :  { %v28_v1 = vld [vmem:[%s351_s1] sm:$0xff]  ;;  %54 = vmatpush.msra.mxu0 %v27_v0 }
   0x3   :  { %v29_v2 = vld [vmem:[%s352_s2] sm:$0xff] }
   0x4   :  { %14 = vsyncpa [#allocation5], 0  ;;  %196 = vmatmul.msk.f32.vlgmr.msra.gmra.mxu0 %vm35_vm0, %v28_v1  ;;  %32 = vperm.xlu0 %213, %v29_v2   ;;  %v61_v4 = vld [vmem:[%s354_s4] sm:$0xff]  ;;  %v114_v34 = vld [vmem:[%s355_s5 + $0x10] sm:$0xff]  ;;  %vm116_vm1 = vcmask 130048   ;;  %s271_s14 = smov [#allocation4]  }
   0x5   :  { %v60_v9 = vld [vmem:[%s353_s3] sm:$0xff]  ;;  %v115_v35 = vld [vmem:[%s355_s5 + $0x18] sm:$0xff]  ;;  %v113_v37 = vld [vmem:[%s355_s5 + $0x8] sm:$0xff]  ;;  %s180_s15 = sshll.u32 %s271_s14, 4  ;;  %s182_s18 = sshll.u32 %s357_s7, 4  ;;  %s181_s15 = int_to_ptr.vmem [resolvable:$true] %s180_s15  ;;  %s183_s18 = int_to_ptr.hbm [resolvable:$true] %s182_s18 }
   0x6   :  { %v112_v36 = vld [vmem:[%s355_s5] sm:$0xff]  ;;  %s272_s19 = smov [#allocation2]   ;;  %s168_s22 = sshll.u32 %s356_s6, 4  ;;  %s169_s22 = int_to_ptr.hbm [resolvable:$true] %s168_s22 }
   0x7   :  { %s166_s5 = sshll.u32 %s272_s19, 4  ;;  %s273_s7 = smov 128   ;;  %s167_s5 = int_to_ptr.vmem [resolvable:$true] %s166_s5 }
   0x8   :  { %s274_s23 = smov 8  }
   0xc   :  { %64 = vperm.xlu0 %213, %v61_v4  }
  0x76   :  { %v33_v5 = vpop.permute.xlu0 %32 }
  0x7e   :  { %v65_v10 = vpop.permute.xlu0 %64 }
  0x81   :  { %v56_v6 = vpop.f32.mrf.mxu0 }
  0x82   :  { %v57_v7 = vadd.f32 %v56_v6, %v33_v5 }
  0x84   :  { %v59_v8 = vmax.f32 %v57_v7, 0.0 }
  0x86   :  { %85 = vmatpush.msra.mxu1 %v59_v8 }
  0x87   :  { %197 = vmatmul.msk.f32.vlgmr.msra.gmra.mxu1 %vm35_vm0, %v60_v9 }
 0x104   :  { %v87_v11 = vpop.f32.mrf.mxu1 }
 0x105   :  { %v88_v12 = vadd.f32 %v87_v11, %v65_v10 }
 0x107   :  { %v90_v13 = vrot.slane %v88_v12, 4 }
 0x109   :  { %v91_v14 = vmax.f32 %v88_v12, %v90_v13 }
 0x10b   :  { %v92_v15 = vrot.slane %v91_v14, 2 }
 0x10d   :  { %v93_v16 = vmax.f32 %v91_v14, %v92_v15 }
 0x10f   :  { %v94_v17 = vrot.slane %v93_v16, 1 }
 0x111   :  { %v95_v18 = vmax.f32 %v93_v16, %v94_v17 }
 0x113   :  { %v96_v19 = vsub.f32 %v88_v12, %v95_v18 }
 0x115   :  { %v97_v20 = vmul.f32 1.442695, %v96_v19 }
 0x117   :  { %214 = vpow2.f32 %v97_v20 }
 0x11d   :  { %v215_v21 = vpop.eup %214 }
 0x11e   :  { %v99_v22 = vrot.slane %v215_v21, 4 }
 0x120   :  { %v100_v23 = vadd.f32 %v215_v21, %v99_v22 }
 0x122   :  { %v101_v24 = vrot.slane %v100_v23, 2 }
 0x124   :  { %v102_v25 = vadd.f32 %v101_v24, %v100_v23 }
 0x126   :  { %v103_v26 = vrot.slane %v102_v25, 1 }
 0x128   :  { %v104_v27 = vadd.f32 %v103_v26, %v102_v25 }
 0x12a   :  { %216 = vrcp.f32 %v104_v27 }
 0x130   :  { %v217_v28 = vpop.eup %216 }
 0x131   :  { %v106_v29 = vmul.f32 %v217_v28, %v104_v27 }
 0x133   :  { %v107_v30 = vsub.f32 2.0, %v106_v29 }
 0x135   :  { %v108_v31 = vmul.f32 %v217_v28, %v107_v30 }
 0x137   :  { %v109_v32 = vmul.f32 %v215_v21, %v108_v31 }
 0x139   :  { %143 = vmatpush.msrb.mxu0 %v109_v32  ;;  %110 = vst [vmem:[#allocation4] sm:$0xff] %v109_v32  ;;  %202 = vmatpush.msrb.mxu1 %v109_v32  ;;  %v111_v33 = vmul.f32 %v109_v32, %v27_v0 }
 0x13a   :  { %203 = vmatpush.msra.mxu2 %v109_v32  ;;  %204 = vmatpush.msra.mxu3 %v109_v32  ;;  %185 = dma.vmem_to_hbm [thread:$0]  %s181_s15, 128, %s183_s18, [#allocation5]  }
 0x13b   :  { %144 = vmatpush.msrb.mxu0 %v111_v33  ;;  %205 = vmatpush.msrb.mxu1 %v111_v33 }
 0x13c   :  { %206 = vmatpush.msra.mxu2 %v111_v33  ;;  %207 = vmatpush.msra.mxu3 %v111_v33 }
 0x13d   :  { %200 = vmatmul.msk.f32.vlgmr.msra.gmra.mxu2 %vm116_vm1, %v114_v34  ;;  %201 = vmatmul.msk.f32.vlgmr.msra.gmra.mxu3 %vm116_vm1, %v115_v35 }
 0x13e   :  { %198 = vmatmul.msk.f32.vlgmr.msrb.gmra.mxu0 %vm116_vm1, %v112_v36  ;;  %199 = vmatmul.msk.f32.vlgmr.msrb.gmra.mxu1 %vm116_vm1, %v113_v37 }
 0x1bb   :  { %v146_v38 = vpop.f32.mrf.mxu0  ;;  %v149_v39 = vpop.f32.mrf.mxu1 }
 0x1bc   :  { %158 = vst [vmem:[#allocation2] sm:$0xff] %v146_v38 }
 0x1bd   :  { %159 = vst [vmem:[#allocation2 + $0x8] sm:$0xff] %v149_v39 }
 0x1c0   :  { %v152_v40 = vpop.f32.mrf.mxu2  ;;  %v155_v41 = vpop.f32.mrf.mxu3 }
 0x1c1   :  { %160 = vst [vmem:[#allocation2 + $0x10] sm:$0xff] %v152_v40 }
 0x1c2   :  { %161 = vst [vmem:[#allocation2 + $0x18] sm:$0xff] %v155_v41 }
 0x1c3   :  { %174 = dma.vmem_to_hbm [thread:$0]  %s167_s5, 512, %s169_s22, [#allocation3], %s273_s7, %s273_s7, %s274_s23  }
 0x1c4   :  { %266 = dma.done.wait [#allocation3], 512  }
 0x1c5   :  { %267 = vsyncadd [#allocation3], 4294966784 }
 0x1c6   :  { %268 = dma.done.wait [#allocation5], 128  }
 0x1c7   :  { %269 = vsyncadd [#allocation5], 4294967168 }
 0x1c8   :  { %194 = vsyncpa [#allocation3], 1 }
 0x1c9   :  { %195 = vsyncpa [#allocation5], 1 }

</bundles_post_ra>
